<compile_context>
chip_gen: v6e
topology: v6e:2x2x1
jax: 0.10.0
libtpu: 0.0.40
codegen_flags: <defaults>
</compile_context>

<pallas_src>
import functools

import jax
import jax.numpy as jnp
from jax.experimental import pallas as pl
from jax.experimental.pallas import tpu as pltpu


# --------------------------------------------------------------------------
# small static helpers (all run at trace time / construction time)
# --------------------------------------------------------------------------

def _round_up(x: int, m: int) -> int:
    return (x + m - 1) // m * m


def _vmem_capacity_bytes() -> int:
    """Per-generation VMEM capacity; conservative 64 MiB (v7x) fallback."""
    try:
        info = pltpu.get_tpu_info()
        cap = getattr(info, "vmem_capacity_bytes", None)
        if cap:
            return int(cap)
    except Exception:
        pass
    return 64 << 20


def _divisor_tiles(dim_pad: int):
    """All tile sizes that are multiples of 128 and divide dim_pad exactly."""
    m = dim_pad // 128
    return sorted(128 * q for q in range(1, m + 1) if m % q == 0)


def _largest_tile(dim_pad: int, cap: int) -> int:
    """Largest 128-multiple divisor of dim_pad not exceeding cap (>= 128)."""
    best = 128
    for t in _divisor_tiles(dim_pad):
        if t <= max(cap, 128):
            best = t
    return best


def _choose_mn(n: int, h_pad: int, tile_m: int, tile_n: int, tk: int,
               vmem_cap: int, out_itemsize: int):
    """Pick (tm, tn) for this batch size under a VMEM budget.

    Prefers a single M tile covering the whole batch (W then streams from HBM
    exactly once), minimizes M padding otherwise, and keeps >=2 N tiles when
    the grid would otherwise be a single tile (v7x 2-TensorCore utilization).
    """
    sub = 16  # operands are bf16 in-kernel -> 16-row sublane packing
    budget = int(0.6 * vmem_cap)

    tiles_n = _divisor_tiles(h_pad)
    tn = max(t for t in tiles_n if t <= max(tile_n, 128))

    def footprint(tm_, tn_):
        return (2 * tm_ * tk * 2                 # x tiles (bf16, double-buffered)
                + 2 * tk * tn_ * 2               # W tiles (bf16, double-buffered)
                + 2 * 1 * tn_ * 4                # bias tiles (f32)
                + 2 * tm_ * tn_ * out_itemsize   # output tiles
                + (tm_ * tn_ * 4 if out_itemsize < 4 else 0))  # f32 acc scratch

    # Shrink tn if even the minimum-M footprint would blow the budget
    # (only triggers for absurd user-supplied tile sizes).
    while footprint(sub, tn) > budget and tn > 128:
        tn = max(t for t in tiles_n if t < tn)

    # Largest M tile allowed by the cap and the VMEM budget.
    tm_cap = max(sub, (tile_m // sub) * sub)
    while tm_cap > sub and footprint(tm_cap, tn) > budget:
        tm_cap -= sub

    tm_full = _round_up(n, sub)
    if tm_full <= tm_cap:
        tm = tm_full                      # one M tile: W read from HBM once
    else:
        best_pad, best_tm = None, sub
        for cand in range(sub, tm_cap + 1, sub):
            pad = _round_up(n, cand) - n
            if best_pad is None or pad < best_pad or (pad == best_pad and cand > best_tm):
                best_pad, best_tm = pad, cand
        tm = best_tm
    n_pad = _round_up(n, tm)

    # Keep >=2 N tiles when the whole problem would otherwise be a single-tile
    # grid, so the "parallel" j axis can shard across v7x's two TensorCores.
    if n_pad // tm == 1 and tn == h_pad and h_pad >= 256:
        tn = max(t for t in tiles_n if t < tn)

    return tm, tn


# --------------------------------------------------------------------------
# kernels
# --------------------------------------------------------------------------

def _linear_kernel_f32_out(x_ref, w_ref, b_ref, o_ref):
    """y = x @ W + b, f32 output block doubles as the K-loop accumulator."""
    k = pl.program_id(2)

    @pl.when(k == 0)
    def _init():
        # Seed the accumulator with the broadcast bias (saves the finalize add).
        o_ref[...] = jnp.broadcast_to(b_ref[...], o_ref.shape).astype(o_ref.dtype)

    o_ref[...] += jnp.dot(x_ref[...], w_ref[...],
                          preferred_element_type=jnp.float32)


def _linear_kernel_narrow_out(x_ref, w_ref, b_ref, o_ref, acc_ref):
    """Same, but with a dedicated f32 accumulator for sub-f32 output dtypes."""
    k = pl.program_id(2)

    @pl.when(k == 0)
    def _init():
        acc_ref[...] = jnp.broadcast_to(b_ref[...], acc_ref.shape)

    acc_ref[...] += jnp.dot(x_ref[...], w_ref[...],
                            preferred_element_type=jnp.float32)

    @pl.when(k == pl.num_programs(2) - 1)
    def _finalize():
        o_ref[...] = acc_ref[...].astype(o_ref.dtype)


# --------------------------------------------------------------------------
# pallas_call wrapper
# --------------------------------------------------------------------------

@functools.partial(jax.jit, static_argnames=("tm", "tn", "tk", "h"))
def _padded_linear(x, w_pad, b_pad, *, tm, tn, tk, h):
    """Tiled y = x @ W + b over pre-padded W/b; pads x in-jit; slices result."""
    n, d = x.shape
    d_pad, h_pad = w_pad.shape
    out_dtype = x.dtype
    out_itm = jnp.dtype(out_dtype).itemsize
    f32_out = jnp.dtype(out_dtype) == jnp.dtype(jnp.float32)

    # bf16 MXU operands; f32 accumulation preserved inside the kernel.
    x_in = x.astype(jnp.bfloat16)
    n_pad = _round_up(n, tm)
    if n_pad != n or d_pad != d:
        x_in = jnp.pad(x_in, ((0, n_pad - n), (0, d_pad - d)))
    w_in = w_pad.astype(jnp.bfloat16)          # no-op if already cast at init
    b_in = b_pad.astype(jnp.float32)

    grid = (n_pad // tm, h_pad // tn, d_pad // tk)
    gi, gj, _ = grid

    # Bytes include the x re-read per N tile and the W re-read per M tile.
    cost = pl.CostEstimate(
        flops=2 * n_pad * d_pad * h_pad,
        transcendentals=0,
        bytes_accessed=(n_pad * d_pad * 2 * gj
                        + d_pad * h_pad * 2 * gi
                        + h_pad * 4 * gi
                        + n_pad * h_pad * out_itm),
    )

    kernel = _linear_kernel_f32_out if f32_out else _linear_kernel_narrow_out
    scratch = [] if f32_out else [pltpu.VMEM((tm, tn), jnp.float32)]

    vmem_bytes = (2 * tm * tk * 2 + 2 * tk * tn * 2 + 2 * tn * 4
                  + 2 * tm * tn * out_itm + (0 if f32_out else tm * tn * 4))
    vmem_cap = _vmem_capacity_bytes()
    ceiling = max(16 << 20, vmem_cap - (8 << 20))   # always below physical VMEM
    vmem_limit = int(min(ceiling, max(32 << 20, 2 * vmem_bytes)))

    out = pl.pallas_call(
        kernel,
        out_shape=jax.ShapeDtypeStruct((n_pad, h_pad), out_dtype),
        grid_spec=pltpu.PrefetchScalarGridSpec(
            num_scalar_prefetch=0,
            grid=grid,
            in_specs=[
                pl.BlockSpec((tm, tk), lambda i, j, k: (i, k)),   # batch rows (streamed K)
                pl.BlockSpec((tk, tn), lambda i, j, k: (k, j)),   # weight tile (streamed K)
                # bias is tiny; default double-buffering is fine.
                # TODO(synk): on v5e, consider pipeline_mode=pl.Buffered(3) on the
                # W spec if profiling shows the W-tile DMA exposed.
                pl.BlockSpec((1, tn), lambda i, j, k: (0, j)),
            ],
            out_specs=pl.BlockSpec((tm, tn), lambda i, j, k: (i, j)),
            scratch_shapes=scratch,
        ),
        compiler_params=pltpu.CompilerParams(
            dimension_semantics=("parallel", "parallel", "arbitrary"),
            vmem_limit_bytes=vmem_limit,
        ),
        cost_estimate=cost,
    )(x_in, w_in, b_in)

    return out[:n, :h]
    # TODO(synk): v6e could add an int8-weight variant (another ~2x + half the
    # W HBM traffic); keep it generation-gated since v7x's MXU is fp8-only.


def data_parallelized_forward(x, w, b, *, tile_m=512, tile_n=1024, tile_k=512):
    """Standalone full-batch y = x @ W + b (pads W/b per call; prefer the class,
    which hoists the weight padding/cast out of the per-step path)."""
    d, h = w.shape
    d_pad = _round_up(d, 128)
    h_pad = _round_up(h, 128)
    tk = _largest_tile(d_pad, tile_k)
    w_pad = jnp.pad(w, ((0, d_pad - d), (0, h_pad - h))).astype(jnp.bfloat16)
    b_pad = jnp.pad(b.astype(jnp.float32), ((0, 0), (0, h_pad - h)))
    tm, tn = _choose_mn(x.shape[0], h_pad, tile_m, tile_n, tk,
                        _vmem_capacity_bytes(), jnp.dtype(x.dtype).itemsize)
    return _padded_linear(x, w_pad, b_pad, tm=tm, tn=tn, tk=tk, h=h)


# --------------------------------------------------------------------------
# module wrapper
# --------------------------------------------------------------------------

class DataParallelizedModuleKernel:
    """Mirrors DataParallelizedModule's bookkeeping around a single TPU kernel.

    The logical num_children only drives the chunk_sizes accounting; the
    forward compute is one hardware-tiled kernel over the whole batch, which
    is exactly equivalent to scatter -> child(chunk) -> gather for a row-wise
    child module.  Static weights are padded and cast to bf16 once here, so
    the per-call work is just the x pad + the kernel.
    """

    def __init__(self, w, b, num_children=2, *, tile_m=512, tile_n=1024, tile_k=512):
        d, h = w.shape
        self._h = h
        self._tile_m = tile_m
        self._tile_n = tile_n
        self._vmem_cap = _vmem_capacity_bytes()

        d_pad = _round_up(d, 128)
        h_pad = _round_up(h, 128)
        self._h_pad = h_pad
        self._tk = _largest_tile(d_pad, tile_k)

        # Hoisted one-time pad + bf16 cast of the static weights.
        self._w_pad = jnp.pad(w, ((0, d_pad - d), (0, h_pad - h))).astype(jnp.bfloat16)
        self._b_pad = jnp.pad(b.astype(jnp.float32), ((0, 0), (0, h_pad - h)))

        self.num_children = max(1, int(num_children))
        # int64 in torch; int32 here for TPU friendliness.
        self.chunk_sizes = jnp.zeros((self.num_children,), dtype=jnp.int32)

    def _scatter_sizes(self, n):
        # torch.cuda.comm.scatter splits dim 0 into near-equal chunks.
        base, rem = divmod(n, self.num_children)
        return jnp.array(
            [base + (1 if i < rem else 0) for i in range(self.num_children)],
            dtype=jnp.int32,
        )

    def forward(self, x):
        # Accumulate scattered chunk sizes, as in the torch forward.
        self.chunk_sizes = self.chunk_sizes + self._scatter_sizes(x.shape[0])
        tm, tn = _choose_mn(x.shape[0], self._h_pad, self._tile_m, self._tile_n,
                            self._tk, self._vmem_cap, jnp.dtype(x.dtype).itemsize)
        return _padded_linear(x, self._w_pad, self._b_pad,
                              tm=tm, tn=tn, tk=self._tk, h=self._h)

    def zero_grad(self):
        self.chunk_sizes = jnp.zeros((self.num_children,), dtype=jnp.int32)

    # TODO(synk): broadcast_gradients / synchronize_children are multi-device
    # gradient bookkeeping (backward-pass, not forward compute); no kernel needed.


if __name__ == "__main__":
    key = jax.random.PRNGKey(0)
    kx, kw, kb, kx2 = jax.random.split(key, 4)

    N, D, H = 16, 128, 128          # batch, in-features, out-features
    NUM_CHILDREN = 2                # simulated "devices" (bookkeeping only)

    x = jax.random.normal(kx, (N, D), dtype=jnp.float32)
    w = jax.random.normal(kw, (D, H), dtype=jnp.float32) * 0.05
    b = jax.random.normal(kb, (1, H), dtype=jnp.float32) * 0.1

    mod = DataParallelizedModuleKernel(w, b, num_children=NUM_CHILDREN)

    out = jax.block_until_ready(mod.forward(x))
    ref = x @ w + b
    assert out.shape == (N, H)
    # bf16 MXU operands with f32 accumulation: loosen tolerance vs f32 reference.
    assert jnp.allclose(out, ref, atol=5e-2, rtol=5e-2), "mismatch vs reference"

    # Second call with a batch that is not a sublane multiple (exercises the
    # in-jit x padding / ragged-M tile selection) and chunk_sizes accumulation.
    N2 = 10
    x2 = jax.random.normal(kx2, (N2, D), dtype=jnp.float32)
    out2 = jax.block_until_ready(mod.forward(x2))
    ref2 = x2 @ w + b
    assert out2.shape == (N2, H)
    assert jnp.allclose(out2, ref2, atol=5e-2, rtol=5e-2), "mismatch vs reference (call 2)"
    assert int(mod.chunk_sizes.sum()) == N + N2

    print("KERNEL_OK")
</pallas_src>

<mosaic_0001>
module attributes {stable_mosaic.version = 11 : i64} {
  func.func @_linear_kernel_f32_out(%arg0: i32, %arg1: i32, %arg2: i32, %arg3: memref<16x128xbf16, #tpu.memory_space<vmem>>, %arg4: memref<128x128xbf16, #tpu.memory_space<vmem>>, %arg5: memref<1x128xf32, #tpu.memory_space<vmem>>, %arg6: memref<16x128xf32, #tpu.memory_space<vmem>>) attributes {dimension_semantics = [#tpu.dimension_semantics<parallel>, #tpu.dimension_semantics<parallel>, #tpu.dimension_semantics<arbitrary>], iteration_bounds = array<i64: 1, 1, 1>, scalar_prefetch = 0 : i64, scratch_operands = 0 : i64, tpu.core_type = #tpu.core_type<tc>, window_params = [{transform_indices = @transform_0, window_bounds = array<i64: 16, 128>}, {transform_indices = @transform_1, window_bounds = array<i64: 128, 128>}, {transform_indices = @transform_2, window_bounds = array<i64: 1, 128>}, {transform_indices = @transform_3, window_bounds = array<i64: 16, 128>}]} {
    %c0_i32 = arith.constant 0 : i32
    %0 = arith.cmpi eq, %arg2, %c0_i32 : i32
    %1 = arith.extui %0 : i1 to i32
    %c0_i32_0 = arith.constant 0 : i32
    %2 = arith.cmpi ne, %1, %c0_i32_0 : i32
    scf.if %2 {
      %c0_8 = arith.constant 0 : index
      %c0_9 = arith.constant 0 : index
      %9 = vector.load %arg5[%c0_8, %c0_9] : memref<1x128xf32, #tpu.memory_space<vmem>>, vector<1x128xf32>
      %10 = vector.shape_cast %9 : vector<1x128xf32> to vector<1x128xf32>
      %11 = vector.broadcast %10 : vector<1x128xf32> to vector<16x128xf32>
      %c0_10 = arith.constant 0 : index
      %c0_11 = arith.constant 0 : index
      %12 = vector.load %arg6[%c0_10, %c0_11] : memref<16x128xf32, #tpu.memory_space<vmem>>, vector<16x128xf32>
      tpu.vector_store %arg6[%c0_10, %c0_11], %11 {strides = array<i32>} : memref<16x128xf32, #tpu.memory_space<vmem>>, vector<16x128xf32>,
    } else {
    }
    %c0 = arith.constant 0 : index
    %c0_1 = arith.constant 0 : index
    %3 = vector.load %arg6[%c0, %c0_1] : memref<16x128xf32, #tpu.memory_space<vmem>>, vector<16x128xf32>
    %c0_2 = arith.constant 0 : index
    %c0_3 = arith.constant 0 : index
    %4 = vector.load %arg3[%c0_2, %c0_3] : memref<16x128xbf16, #tpu.memory_space<vmem>>, vector<16x128xbf16>
    %c0_4 = arith.constant 0 : index
    %c0_5 = arith.constant 0 : index
    %5 = vector.load %arg4[%c0_4, %c0_5] : memref<128x128xbf16, #tpu.memory_space<vmem>>, vector<128x128xbf16>
    %cst = arith.constant dense<0.000000e+00> : vector<16x128xf32>
    %6 = tpu.matmul %4, %5, %cst {dimension_numbers = #tpu.dot_dimension_numbers<[1], [0], [0], [1], [0, 0, 1, 1], [], []>} : vector<16x128xbf16>, vector<128x128xbf16>, vector<16x128xf32> -> vector<16x128xf32>
    %7 = arith.addf %3, %6 : vector<16x128xf32>
    %c0_6 = arith.constant 0 : index
    %c0_7 = arith.constant 0 : index
    %8 = vector.load %arg6[%c0_6, %c0_7] : memref<16x128xf32, #tpu.memory_space<vmem>>, vector<16x128xf32>
    tpu.vector_store %arg6[%c0_6, %c0_7], %7 {strides = array<i32>} : memref<16x128xf32, #tpu.memory_space<vmem>>, vector<16x128xf32>,
    return
  }
  func.func @transform_0(%arg0: i32, %arg1: i32, %arg2: i32) -> (i32, i32) {
    %c0_i32 = arith.constant 0 : i32
    return %arg0, %arg2 : i32, i32
  }
  func.func @transform_1(%arg0: i32, %arg1: i32, %arg2: i32) -> (i32, i32) {
    %c0_i32 = arith.constant 0 : i32
    return %arg2, %arg1 : i32, i32
  }
  func.func @transform_2(%arg0: i32, %arg1: i32, %arg2: i32) -> (i32, i32) {
    %c0_i32 = arith.constant 0 : i32
    %c0_i32_0 = arith.constant 0 : i32
    return %c0_i32, %arg1 : i32, i32
  }
  func.func @transform_3(%arg0: i32, %arg1: i32, %arg2: i32) -> (i32, i32) {
    %c0_i32 = arith.constant 0 : i32
    return %arg0, %arg1 : i32, i32
  }
}

</mosaic_0001>

<bundles_post_ra>
// kernel: _padded_linear.1
= control target key start
LH: loop header
LB: loop body
LE: loop exit
PB: predicated region body
PF: predicated region fallthrough
CT: control target
= control target key end

     0   :  { %8 = vsyncpa [#allocation3], 0  ;;  %s319_s0 = inlined_call_operand.vmem [shape: bf16[16,128], index: 0, kind: input, shape index: {}]   ;;  %s320_s1 = inlined_call_operand.hbm [shape: bf16[128,128], index: 1, kind: input, shape index: {}]   ;;  %s321_s2 = inlined_call_operand.vmem [shape: f32[1,128], index: 2, kind: input, shape index: {}]   ;;  %s322_s3 = inlined_call_operand.hbm [shape: f32[16,128], index: 3, kind: output, shape index: {}]  }
   0x1   :  { %9 = vsyncpa [#allocation4], 0  ;;  %s279_s12 = smov [#allocation2]  }
   0x2   :  { %s17_s13 = sshll.u32 %s279_s12, 4  ;;  %s18_s13 = int_to_ptr.vmem [resolvable:$true] %s17_s13 }
   0x3   :  { %s243_s14 = scalar_lea.vmem %s18_s13, 1024  ;;  %p248_p1 = scmp.lt.s32.totalorder %s18_s13, %s18_s13 }
   0x4   :  { %p244_p0 = scmp.ne.s32.totalorder %s18_s13, %s243_s14  ;;  %p249_p2 = scmp.lt.s32.totalorder %s243_s14, %s243_s14 }
   0x6   :  { %p250_p3 = por %p249_p2, %p248_p1 }
   0x8   :  { %p251_p4 = pnand %p250_p3, %p244_p0 }
   0xa   :  { %254 = shalt.err (!%p251_p4)
}
   0xb   :  { %s280_s15 = smov 64   ;;  %s281_s16 = smov 4  }
   0xc   :  { %23 = dma.hbm_to_vmem [thread:$0]  %s320_s1, 1024, %s18_s13, [#allocation3], %s280_s15, %s280_s15, %s281_s16  }
   0xd   :  { %275 = dma.done.wait [#allocation3], 1024  }
   0xe   :  { %276 = vsyncadd [#allocation3], 4294966272  ;;  %v282_v0 = vmov 0.0   ;;  %vm283_vm0 = vmmov 0   ;;  %v226_v1 = vld [vmem:[#allocation2 + $0x38] sm:$0xff]   ;;  %v227_v2 = vld [vmem:[#allocation2 + $0x30] sm:$0xff]  }
   0xf   :  { %198 = vmatprep.subr.bf16.mxu0 %v282_v0  ;;  %214 = vmatprep.mubr.msk.bf16.mxu0 %vm283_vm0, %v282_v0  ;;  %v228_v3 = vld [vmem:[#allocation2 + $0x28] sm:$0xff]   ;;  %v229_v4 = vld [vmem:[#allocation2 + $0x20] sm:$0xff]   ;;  %v230_v5 = vld [vmem:[#allocation2 + $0x18] sm:$0xff]   ;;  %s284_s22 = smov [#allocation5]  }
  0x10   :  { %199 = vmatpush3.bf16.msra.mxu0 %v226_v1  ;;  %v231_v6 = vld [vmem:[#allocation2 + $0x10] sm:$0xff]   ;;  %v232_v7 = vld [vmem:[#allocation2 + $0x8] sm:$0xff]   ;;  %v233_v8 = vld [vmem:[#allocation2] sm:$0xff]   ;;  %s167_s23 = sshll.u32 %s284_s22, 4  ;;  %s168_s23 = int_to_ptr.vmem [resolvable:$true] %s167_s23 }
  0x11   :  { %200 = vmatprep.subr.bf16.mxu0 %v282_v0  ;;  %v234_v9 = vld [vmem:[%s319_s0] sm:$0xff]   ;;  %s255_s24 = scalar_lea.vmem %s168_s23, 256  ;;  %p260_p6 = scmp.lt.s32.totalorder %s168_s23, %s168_s23 }
  0x12   :  { %v179_v10 = vld [vmem:[%s321_s2] ss:$0 sm:$0xff]  ;;  %p256_p5 = scmp.ne.s32.totalorder %s168_s23, %s255_s24  ;;  %p261_p7 = scmp.lt.s32.totalorder %s255_s24, %s255_s24 }
  0x14   :  { %201 = vmatpush3.bf16.msra.mxu0 %v227_v2  ;;  %p262_p8 = por %p261_p7, %p260_p6 }
  0x15   :  { %202 = vmatprep.subr.bf16.mxu0 %v282_v0 }
  0x16   :  { %p263_p9 = pnand %p262_p8, %p256_p5 }
  0x18   :  { %203 = vmatpush3.bf16.msra.mxu0 %v228_v3 }
  0x19   :  { %204 = vmatprep.subr.bf16.mxu0 %v282_v0 }
  0x1c   :  { %205 = vmatpush3.bf16.msra.mxu0 %v229_v4 }
  0x1d   :  { %206 = vmatprep.subr.bf16.mxu0 %v282_v0 }
  0x20   :  { %207 = vmatpush3.bf16.msra.mxu0 %v230_v5 }
  0x21   :  { %208 = vmatprep.subr.bf16.mxu0 %v282_v0 }
  0x24   :  { %209 = vmatpush3.bf16.msra.mxu0 %v231_v6 }
  0x25   :  { %210 = vmatprep.subr.bf16.mxu0 %v282_v0 }
  0x28   :  { %211 = vmatpush3.bf16.msra.mxu0 %v232_v7 }
  0x29   :  { %212 = vmatprep.subr.bf16.mxu0 %v282_v0 }
  0x2c   :  { %213 = vmatpush3.bf16.msra.mxu0 %v233_v8 }
  0x2f   :  { %215 = vmatmul.mubr.bf16.vlgmr.msra.gmra.mxu0 %v234_v9 }
  0xef   :  { %v151_v11 = vpop.f32.mrf.mxu0 }
  0xf0   :  { %v158_v12 = vadd.f32 %v179_v10, %v151_v11 }
  0xf1   :  { %v216_v13 = vpop.f32.mrf.mxu0 }
  0xf2   :  { %160 = vst [vmem:[#allocation5] sm:$0xff] %v158_v12 }
  0xf3   :  { %v154_v14 = vpop.f32.mrf.mxu0 }
  0xf4   :  { %v159_v15 = vadd.f32 %v179_v10, %v154_v14 }
  0xf5   :  { %v217_v16 = vpop.f32.mrf.mxu0 }
  0xf6   :  { %161 = vst [vmem:[#allocation5 + $0x8] sm:$0xff] %v159_v15 }
  0xf7   :  { %266 = shalt.err (!%p263_p9)
}
  0xf8   :  { %s285_s0 = smov 128   ;;  %s286_s2 = smov 8  }
  0xf9   :  { %173 = dma.vmem_to_hbm [thread:$0]  %s168_s23, 256, %s322_s3, [#allocation4], %s285_s0, %s285_s0, %s286_s2  }
  0xfa   :  { %277 = dma.done.wait [#allocation4], 256  }
  0xfb   :  { %278 = vsyncadd [#allocation4], 4294967040 }
  0xfc   :  { %177 = vsyncpa [#allocation3], 1 }
  0xfd   :  { %178 = vsyncpa [#allocation4], 1 }

</bundles_post_ra>
